<compile_context>
chip_gen: v7x
topology: tpu7x:2x2x1
jax: 0.10.0
libtpu: 0.0.40
codegen_flags: <defaults>
</compile_context>

<pallas_src>
import jax
import jax.numpy as jnp
from jax.experimental import pallas as pl
from jax.experimental.pallas import tpu as pltpu


def _fused_affine_kernel(wb_ref, x_ref, o_ref):
    """o = Wf @ x + bf, dense (8, TB) VPU compute, feature-major.

    wb_ref: (8, 4)  f32 VMEM   [Wf | bf]   (fused trunk+heads, bias in col 3)
    x_ref : (3, TB) f32 VMEM   input tile, batch on the 128-lane axis
    o_ref : (8, TB) f32 VMEM   fused output (rows 0..3 = head1, rows 4..7 = head2)
    """
    tb = x_ref.shape[1]
    shape = (8, tb)

    # Sublane-broadcast each input-feature row across the 8 output rows.
    x0 = jnp.broadcast_to(x_ref[0:1, :], shape)
    x1 = jnp.broadcast_to(x_ref[1:2, :], shape)
    x2 = jnp.broadcast_to(x_ref[2:3, :], shape)

    # Lane-broadcast each fused weight column / bias across the batch lanes.
    w0 = jnp.broadcast_to(wb_ref[:, 0:1], shape)
    w1 = jnp.broadcast_to(wb_ref[:, 1:2], shape)
    w2 = jnp.broadcast_to(wb_ref[:, 2:3], shape)
    b = jnp.broadcast_to(wb_ref[:, 3:4], shape)

    # 3 vector MACs + bias, one unmasked (8, TB) store.
    o_ref[...] = w0 * x0 + w1 * x1 + w2 * x2 + b


def multihead_forward(x, w_lin, b_lin, w1, b1, w2, b2, *, block_b=65536):
    """x: (B, 3) f32; params in PyTorch (out, in) layout. Returns (out1, out2), each (B, 4)."""
    B = x.shape[0]

    # Fold the affine trunk into both heads (static algebra, free in the wrapper):
    #   head(x) = (x @ W_lin^T + b_lin) @ W_h^T + b_h = x @ (W_h W_lin)^T + (W_h b_lin + b_h)
    w_heads = jnp.concatenate([w1, w2], axis=0)           # (8, 2)
    b_heads = jnp.concatenate([b1, b2], axis=0)           # (8,)
    wf = w_heads @ w_lin                                   # (8, 3)
    bf = w_heads @ b_lin + b_heads                         # (8,)
    wb = jnp.concatenate([wf, bf[:, None]], axis=1)        # (8, 4) -> one VMEM tile

    # Feature-major: batch on the 128-lane axis (lane-dense loads/stores).
    x_t = x.T                                               # (3, B)

    # Tile choice: large lane tiles amortize per-step overhead; for mid-sized B
    # keep >= 2 grid steps so v7x's two TensorCores both get work.
    if B <= 128:
        tb = B                                              # single block (full dims)
    else:
        half = -(-B // 2)                                   # cdiv(B, 2)
        half_r = ((half + 127) // 128) * 128                # round up to lane multiple
        tb = min(block_b, half_r)
    grid_n = pl.cdiv(B, tb)                                 # ragged tail handled by Pallas

    out = pl.pallas_call(
        _fused_affine_kernel,
        out_shape=jax.ShapeDtypeStruct((8, B), jnp.float32),
        grid=(grid_n,),
        in_specs=[
            pl.BlockSpec((8, 4), lambda i: (0, 0)),         # fused weights+bias
            pl.BlockSpec((3, tb), lambda i: (0, i)),        # x tile (3, tb)
        ],
        out_specs=pl.BlockSpec((8, tb), lambda i: (0, i)),  # lane-dense (8, tb) slab
        compiler_params=pltpu.CompilerParams(
            dimension_semantics=("parallel",)),
    )(wb, x_t)

    # Preserve the module contract: two (B, 4) outputs.
    out1 = out[0:4, :].T
    out2 = out[4:8, :].T
    return out1, out2


def init_params(key):
    """nn.Linear-style init U(-1/sqrt(fan_in), +1/sqrt(fan_in)), PyTorch layout."""
    ks = jax.random.split(key, 6)

    def linear(kw, kb, fan_in, fan_out):
        bound = 1.0 / jnp.sqrt(jnp.float32(fan_in))
        w = jax.random.uniform(kw, (fan_out, fan_in), jnp.float32, -bound, bound)
        b = jax.random.uniform(kb, (fan_out,), jnp.float32, -bound, bound)
        return w, b

    w_lin, b_lin = linear(ks[0], ks[1], 3, 2)
    w1, b1 = linear(ks[2], ks[3], 2, 4)
    w2, b2 = linear(ks[4], ks[5], 2, 4)
    return w_lin, b_lin, w1, b1, w2, b2


if __name__ == "__main__":
    key = jax.random.PRNGKey(0)
    k_x, k_xl, k_p = jax.random.split(key, 3)

    w_lin, b_lin, w1, b1, w2, b2 = init_params(k_p)

    def reference(xx):
        feat = xx @ w_lin.T + b_lin
        return feat @ w1.T + b1, feat @ w2.T + b2

    # Shipped small shape (single block, grid of 1).
    B = 8
    x = jax.random.normal(k_x, (B, 3), dtype=jnp.float32)
    out1, out2 = multihead_forward(x, w_lin, b_lin, w1, b1, w2, b2)
    out1 = jax.block_until_ready(out1)
    out2 = jax.block_until_ready(out2)
    ref1, ref2 = reference(x)
    assert out1.shape == (B, 4) and out2.shape == (B, 4)
    # Folded trunk reassociates FLOPs; 1e-5 tolerance vs the two-stage reference.
    assert jnp.allclose(out1, ref1, atol=1e-5), "head1 mismatch"
    assert jnp.allclose(out2, ref2, atol=1e-5), "head2 mismatch"

    # Larger batch exercises the multi-step "parallel" grid with a ragged tail.
    Bl = 2500
    xl = jax.random.normal(k_xl, (Bl, 3), dtype=jnp.float32)
    o1l, o2l = multihead_forward(xl, w_lin, b_lin, w1, b1, w2, b2)
    o1l = jax.block_until_ready(o1l)
    o2l = jax.block_until_ready(o2l)
    r1l, r2l = reference(xl)
    assert jnp.allclose(o1l, r1l, atol=1e-5), "head1 mismatch (tiled)"
    assert jnp.allclose(o2l, r2l, atol=1e-5), "head2 mismatch (tiled)"

    print("KERNEL_OK")
</pallas_src>

<mosaic_0001>
module attributes {stable_mosaic.version = 11 : i64} {
  func.func @_fused_affine_kernel(%arg0: i32, %arg1: memref<8x4xf32, #tpu.memory_space<vmem>>, %arg2: memref<3x8xf32, #tpu.memory_space<vmem>>, %arg3: memref<8x8xf32, #tpu.memory_space<vmem>>) attributes {dimension_semantics = [#tpu.dimension_semantics<parallel>], iteration_bounds = array<i64: 1>, scalar_prefetch = 0 : i64, scratch_operands = 0 : i64, tpu.core_type = #tpu.core_type<tc>, window_params = [{pipeline_mode = #tpu.pipeline_mode<synchronous>, transform_indices = @transform_0, window_bounds = array<i64: 8, 4>}, {transform_indices = @transform_1, window_bounds = array<i64: 3, 8>}, {transform_indices = @transform_2, window_bounds = array<i64: 8, 8>}]} {
    %c0 = arith.constant 0 : index
    %c0_0 = arith.constant 0 : index
    %0 = vector.load %arg2[%c0, %c0_0] : memref<3x8xf32, #tpu.memory_space<vmem>>, vector<1x8xf32>
    %1 = vector.shape_cast %0 : vector<1x8xf32> to vector<1x8xf32>
    %2 = vector.broadcast %1 : vector<1x8xf32> to vector<8x8xf32>
    %c1 = arith.constant 1 : index
    %c0_1 = arith.constant 0 : index
    %3 = vector.load %arg2[%c1, %c0_1] : memref<3x8xf32, #tpu.memory_space<vmem>>, vector<1x8xf32>
    %4 = vector.shape_cast %3 : vector<1x8xf32> to vector<1x8xf32>
    %5 = vector.broadcast %4 : vector<1x8xf32> to vector<8x8xf32>
    %c2 = arith.constant 2 : index
    %c0_2 = arith.constant 0 : index
    %6 = vector.load %arg2[%c2, %c0_2] : memref<3x8xf32, #tpu.memory_space<vmem>>, vector<1x8xf32>
    %7 = vector.shape_cast %6 : vector<1x8xf32> to vector<1x8xf32>
    %8 = vector.broadcast %7 : vector<1x8xf32> to vector<8x8xf32>
    %c0_3 = arith.constant 0 : index
    %c0_4 = arith.constant 0 : index
    %9 = vector.load %arg1[%c0_3, %c0_4] : memref<8x4xf32, #tpu.memory_space<vmem>>, vector<8x1xf32>
    %10 = vector.shape_cast %9 : vector<8x1xf32> to vector<8x1xf32>
    %11 = vector.broadcast %10 : vector<8x1xf32> to vector<8x8xf32>
    %c0_5 = arith.constant 0 : index
    %c1_6 = arith.constant 1 : index
    %12 = vector.load %arg1[%c0_5, %c1_6] : memref<8x4xf32, #tpu.memory_space<vmem>>, vector<8x1xf32>
    %13 = vector.shape_cast %12 : vector<8x1xf32> to vector<8x1xf32>
    %14 = vector.broadcast %13 : vector<8x1xf32> to vector<8x8xf32>
    %c0_7 = arith.constant 0 : index
    %c2_8 = arith.constant 2 : index
    %15 = vector.load %arg1[%c0_7, %c2_8] : memref<8x4xf32, #tpu.memory_space<vmem>>, vector<8x1xf32>
    %16 = vector.shape_cast %15 : vector<8x1xf32> to vector<8x1xf32>
    %17 = vector.broadcast %16 : vector<8x1xf32> to vector<8x8xf32>
    %c0_9 = arith.constant 0 : index
    %c3 = arith.constant 3 : index
    %18 = vector.load %arg1[%c0_9, %c3] : memref<8x4xf32, #tpu.memory_space<vmem>>, vector<8x1xf32>
    %19 = vector.shape_cast %18 : vector<8x1xf32> to vector<8x1xf32>
    %20 = vector.broadcast %19 : vector<8x1xf32> to vector<8x8xf32>
    %21 = arith.mulf %11, %2 : vector<8x8xf32>
    %22 = arith.mulf %14, %5 : vector<8x8xf32>
    %23 = arith.addf %21, %22 : vector<8x8xf32>
    %24 = arith.mulf %17, %8 : vector<8x8xf32>
    %25 = arith.addf %23, %24 : vector<8x8xf32>
    %26 = arith.addf %25, %20 : vector<8x8xf32>
    %c0_10 = arith.constant 0 : index
    %c0_11 = arith.constant 0 : index
    %27 = vector.load %arg3[%c0_10, %c0_11] : memref<8x8xf32, #tpu.memory_space<vmem>>, vector<8x8xf32>
    tpu.vector_store %arg3[%c0_10, %c0_11], %26 {strides = array<i32>} : memref<8x8xf32, #tpu.memory_space<vmem>>, vector<8x8xf32>,
    return
  }
  func.func @transform_0(%arg0: i32) -> (i32, i32) {
    %c0_i32 = arith.constant 0 : i32
    %c0_i32_0 = arith.constant 0 : i32
    %c0_i32_1 = arith.constant 0 : i32
    return %c0_i32, %c0_i32_0 : i32, i32
  }
  func.func @transform_1(%arg0: i32) -> (i32, i32) {
    %c0_i32 = arith.constant 0 : i32
    %c0_i32_0 = arith.constant 0 : i32
    return %c0_i32, %arg0 : i32, i32
  }
  func.func @transform_2(%arg0: i32) -> (i32, i32) {
    %c0_i32 = arith.constant 0 : i32
    %c0_i32_0 = arith.constant 0 : i32
    return %c0_i32, %arg0 : i32, i32
  }
}

</mosaic_0001>

<bundles_post_ra>
// kernel: tpu_custom_call.1
= control target key start
LH: loop header
LB: loop body
LE: loop exit
PB: predicated region body
PF: predicated region fallthrough
CT: control target
= control target key end

     0   :  { %v104_v1 = vmov 0   ;;  %v105_v2 = vmov 2   ;;  %s148_s0 = inlined_call_operand.vmem [shape: f32[8,4], index: 0, kind: input, shape index: {}]   ;;  %s149_s1 = inlined_call_operand.vmem [shape: f32[3,8], index: 1, kind: input, shape index: {}]   ;;  %s150_s2 = inlined_call_operand.hbm [shape: f32[8,8], index: 2, kind: output, shape index: {}]  }
   0x1   :  { %v27_v0 = vld [vmem:[%s148_s0] sm:$0xff]  ;;  %75 = vset.pattern.permute.xlu0 %v104_v1  ;;  %77 = vset.pattern.permute.xlu1 %v105_v2 }
   0x2   :  { %7 = vsyncpa [#allocation3], 0  ;;  %30 = vperm.xlu0 %75, %v27_v0   ;;  %38 = vperm.xlu1 %77, %v27_v0   ;;  %v106_v3 = vmov 1   ;;  %v107_v4 = vmov 3   ;;  %v67_v6 = vld [vmem:[%s149_s1] ss:$0 sm:$0xff] }
   0x3   :  { %v68_v7 = vld [vmem:[%s149_s1 + $0x1] ss:$0 sm:$0xff]  ;;  %v69_v9 = vld [vmem:[%s149_s1 + $0x2] ss:$0 sm:$0xff]  ;;  %s108_s16 = smov [#allocation2]   ;;  %vm51_vm0 = vcmask 64512  }
   0x4   :  { %s59_s17 = sshll.u32 %s108_s16, 4  ;;  %s60_s17 = int_to_ptr.vmem [resolvable:$true] %s59_s17 }
   0x5   :  { %s80_s18 = scalar_lea.vmem %s60_s17, 128  ;;  %p85_p1 = scmp.lt.s32.totalorder %s60_s17, %s60_s17 }
   0x6   :  { %76 = vset.pattern.permute.xlu0 %v106_v3  ;;  %78 = vset.pattern.permute.xlu1 %v107_v4  ;;  %p81_p0 = scmp.ne.s32.totalorder %s60_s17, %s80_s18  ;;  %p86_p2 = scmp.lt.s32.totalorder %s80_s18, %s80_s18 }
   0x7   :  { %34 = vperm.xlu0 %76, %v27_v0   ;;  %42 = vperm.xlu1 %78, %v27_v0  }
   0x8   :  { %p87_p3 = por %p86_p2, %p85_p1 }
   0xa   :  { %p88_p4 = pnand %p87_p3, %p81_p0 }
   0xb   :  { %79 = vset.pattern.permute.xlu0 %v107_v4 }
  0x81   :  { %v31_v5 = vpop.permute.xlu0 %30  ;;  %v39_v8 = vpop.permute.xlu1 %38 }
  0x82   :  { %v45_v11 = vmul.f32 %v67_v6, %v31_v5  ;;  %v48_v13 = vmul.f32 %v69_v9, %v39_v8 }
  0x86   :  { %v35_v10 = vpop.permute.xlu0 %34  ;;  %v43_v15 = vpop.permute.xlu1 %42 }
  0x87   :  { %v46_v12 = vmul.f32 %v68_v7, %v35_v10 }
  0x89   :  { %v47_v14 = vadd.f32 %v46_v12, %v45_v11 }
  0x8b   :  { %v49_v16 = vadd.f32 %v48_v13, %v47_v14 }
  0x8d   :  { %v50_v17 = vadd.f32 %v49_v16, %v43_v15 }
  0x8f   :  { %52 = vst.msk [vmem:[#allocation2] sm:$0xff] %vm51_vm0, %v50_v17 }
  0x90   :  { %91 = shalt.err (!%p88_p4)
}
  0x91   :  { %s92_s20 = scalar_lea.hbm %s150_s2, 128 }
  0x92   :  { %p93_p5 = scmp.ne.s32.totalorder %s150_s2, %s92_s20  ;;  %p96_p6 = scmp.lt.u32.totalorder %s92_s20, %s150_s2 }
  0x94   :  { %p98_p7 = pnand %p96_p6, %p93_p5 }
  0x96   :  { %101 = shalt.err (!%p98_p7)
}
  0x97   :  { %62 = dma.vmem_to_hbm [thread:$0]  %s60_s17, 128, %s150_s2, [#allocation3]  }
  0x98   :  { %102 = dma.done.wait [#allocation3], 128  }
  0x99   :  { %103 = vsyncadd [#allocation3], 4294967168 }
  0x9a   :  { %66 = vsyncpa [#allocation3], 1 }

</bundles_post_ra>
